<compile_context>
chip_gen: v7x
topology: tpu7x:2x2x1
jax: 0.10.0
libtpu: 0.0.40
codegen_flags: <defaults>
</compile_context>

<pallas_src>
import functools

import jax
import jax.numpy as jnp
from jax.experimental import pallas as pl
from jax.experimental.pallas import tpu as pltpu


def _round_up(x, m):
    return ((x + m - 1) // m) * m


def _slot_classifier_kernel(x_ref, w_ref, b_ref, o_ref, acc_ref, *, n_out):
    # x_ref: (tile_m, tile_k)   w_ref: (tile_k, n_pad)   b_ref: (1, n_pad) f32
    # o_ref: (tile_m, n_out)    acc_ref: (tile_m, n_pad) f32 scratch
    # TODO(synk): dropout_rate=0.0 -> identity; a nonzero training-mode dropout
    # would use pltpu.prng_seed / pltpu.prng_random_bits + 1/(1-p) scaling here.
    k = pl.program_id(1)

    @pl.when(k == 0)
    def _():
        acc_ref[...] = jnp.zeros_like(acc_ref)

    acc_ref[...] += jnp.dot(
        x_ref[...], w_ref[...], preferred_element_type=jnp.float32
    )

    @pl.when(k == pl.num_programs(1) - 1)
    def _():
        # f32 bias add on the f32 accumulator, then narrow (true-N) store.
        logits = (acc_ref[...] + b_ref[...])[:, :n_out]
        o_ref[...] = logits.astype(o_ref.dtype)


def prepare_slot_classifier_params(weight, bias, param_dtype=None):
    """One-time parameter prep (do at load time, not per call).

    weight: (N, D) in PyTorch nn.Linear convention; bias: (N,).
    param_dtype: optional storage dtype for the transposed weight (e.g.
      jnp.bfloat16 for the bandwidth-optimal path; keep activations bf16
      upstream too).  Bias stays f32 (added post-accumulate in f32).
    Returns (w_t_padded (D, n_pad), b_padded_f32 (1, n_pad), N).
    """
    N, D = weight.shape
    n_pad = max(128, _round_up(N, 128))  # 128-lane-aligned columns for the MXU
    w_t = weight.T
    if param_dtype is not None:
        w_t = w_t.astype(param_dtype)
    w_t_padded = jnp.zeros((D, n_pad), dtype=w_t.dtype).at[:, :N].set(w_t)
    b_padded = (
        jnp.zeros((1, n_pad), dtype=jnp.float32)
        .at[:, :N]
        .set(bias.astype(jnp.float32))
    )
    return w_t_padded, b_padded, N


def _choose_tiles(M, D, n_pad, n_out, x_itemsize, out_itemsize,
                  vmem_budget_bytes=12 * 1024 * 1024, tile_m_cap=512):
    """Pick (tile_m, tile_k) under a conservative VMEM budget.

    The 12 MiB budget fits the scoped-VMEM defaults of v5e (16 MiB) and
    v6e/v7x (32 MiB) and stays far below v7x's 64 MiB physical VMEM per TC.
    """
    # Contraction (K) tiling: keep D whole unless it is large and 128-aligned
    # (a ragged K block would read undefined padding into the accumulator).
    if D % 128 == 0 and D > 1024:
        if D % 512 == 0:
            tile_k = 512
        elif D % 256 == 0:
            tile_k = 256
        else:
            tile_k = 128
    else:
        tile_k = D
    num_k = D // tile_k

    # Row (M) tiling.  Double-buffered x and out tiles, f32 accumulator,
    # double-buffered resident weight tile, padded bias.
    resident = 2 * tile_k * n_pad * x_itemsize + n_pad * 4
    per_row = (2 * tile_k * x_itemsize
               + 2 * max(n_out, 128) * out_itemsize
               + n_pad * 4)
    tile_m = (vmem_budget_bytes - resident) // per_row
    tile_m = max(8, min(tile_m_cap, tile_m))
    tile_m = (tile_m // 8) * 8            # sublane-aligned row blocks
    if M <= tile_m:
        tile_m = M                        # single full-extent row block
    return tile_m, tile_k, num_k


def _on_v7x():
    try:
        return "v7" in jax.devices()[0].device_kind.lower()
    except Exception:  # pragma: no cover - defensive
        return False


@functools.partial(
    jax.jit,
    static_argnames=("num_labels", "tile_m_cap", "min_rows_for_pallas"),
)
def slot_classifier(x, w_t_padded, b_padded, *, num_labels,
                    tile_m_cap=512, min_rows_for_pallas=1024):
    """x: (B, S, D); w_t_padded: (D, n_pad); b_padded: (1, n_pad) f32."""
    B, S, D = x.shape
    n_pad = w_t_padded.shape[1]
    M = B * S
    x2d = x.reshape(M, D)  # layout-preserving, no copy

    # Tiny-M dispatch: a 1-step Pallas grid is pure launch/pipeline overhead;
    # let XLA fuse the small GEMM + bias instead.
    if M < min_rows_for_pallas:
        acc = jnp.dot(x2d, w_t_padded[:, :num_labels],
                      preferred_element_type=jnp.float32)
        out2d = (acc + b_padded[:, :num_labels]).astype(x.dtype)
        return out2d.reshape(B, S, num_labels)

    tile_m, tile_k, num_k = _choose_tiles(
        M, D, n_pad, num_labels, x.dtype.itemsize, x.dtype.itemsize,
        tile_m_cap=tile_m_cap)
    num_m = -(-M // tile_m)  # ragged last block handled by Pallas masking
    grid = (num_m, num_k)

    # Engage both TensorCores on v7x when there is real row-parallel work.
    if _on_v7x() and num_m >= 2 and num_m % 2 == 0:
        m_sem = pltpu.CORE_PARALLEL
    else:
        m_sem = pltpu.PARALLEL

    kernel = functools.partial(_slot_classifier_kernel, n_out=num_labels)

    out2d = pl.pallas_call(
        kernel,
        out_shape=jax.ShapeDtypeStruct((M, num_labels), x.dtype),
        grid=grid,
        in_specs=[
            pl.BlockSpec((tile_m, tile_k), lambda i, k: (i, k)),  # x streamed
            pl.BlockSpec((tile_k, n_pad), lambda i, k: (k, 0)),   # W^T
            pl.BlockSpec((1, n_pad), lambda i, k: (0, 0)),        # bias (f32)
        ],
        # Narrow (true-N) writeback: last dim == full array dim, so it's legal
        # even though num_labels < 128; avoids 128-wide stores + a slice pass.
        out_specs=pl.BlockSpec((tile_m, num_labels), lambda i, k: (i, 0)),
        scratch_shapes=[pltpu.VMEM((tile_m, n_pad), jnp.float32)],
        compiler_params=pltpu.CompilerParams(
            dimension_semantics=(m_sem, pltpu.ARBITRARY),
        ),
    )(x2d, w_t_padded, b_padded)

    return out2d.reshape(B, S, num_labels)


if __name__ == "__main__":
    # Small shapes consistent with the module: (batch, seq, hidden) features.
    B, S, D = 2, 8, 32          # input_dim = 32
    N = 16                      # num_slot_labels = 16

    key = jax.random.PRNGKey(0)
    kx, kw, kb = jax.random.split(key, 3)

    x = jax.random.normal(kx, (B, S, D), dtype=jnp.float32)
    # Deterministic synthetic parameters (nn.Linear shapes: W (N, D), b (N,)).
    weight = jax.random.normal(kw, (N, D), dtype=jnp.float32) * 0.05
    bias = jax.random.normal(kb, (N,), dtype=jnp.float32) * 0.01

    # One-time parameter preparation (transpose + lane padding).
    w_t_padded, b_padded, num_labels = prepare_slot_classifier_params(weight, bias)

    # Force the Pallas path even at this tiny size so the kernel is exercised.
    out = slot_classifier(x, w_t_padded, b_padded, num_labels=num_labels,
                          min_rows_for_pallas=0)
    out = jax.block_until_ready(out)

    # Reference check in plain JAX (same math as PyTorch Linear).
    ref = x @ weight.T + bias
    assert out.shape == (B, S, N)
    assert jnp.allclose(out, ref, atol=1e-5, rtol=1e-5)

    # Also exercise the default dispatch (tiny M -> fused XLA fallback).
    out_small = slot_classifier(x, w_t_padded, b_padded, num_labels=num_labels)
    out_small = jax.block_until_ready(out_small)
    assert jnp.allclose(out_small, ref, atol=1e-5, rtol=1e-5)

    print("KERNEL_OK")
</pallas_src>

<mosaic_0001>
module attributes {stable_mosaic.version = 11 : i64} {
  func.func @_slot_classifier_kernel(%arg0: i32, %arg1: i32, %arg2: memref<16x32xf32, #tpu.memory_space<vmem>>, %arg3: memref<32x128xf32, #tpu.memory_space<vmem>>, %arg4: memref<1x128xf32, #tpu.memory_space<vmem>>, %arg5: memref<16x16xf32, #tpu.memory_space<vmem>>, %arg6: memref<16x128xf32, #tpu.memory_space<vmem>>) attributes {dimension_semantics = [#tpu.dimension_semantics<parallel>, #tpu.dimension_semantics<arbitrary>], iteration_bounds = array<i64: 1, 1>, scalar_prefetch = 0 : i64, scratch_operands = 1 : i64, tpu.core_type = #tpu.core_type<tc>, window_params = [{transform_indices = @transform_0, window_bounds = array<i64: 16, 32>}, {transform_indices = @transform_1, window_bounds = array<i64: 32, 128>}, {pipeline_mode = #tpu.pipeline_mode<synchronous>, transform_indices = @transform_2, window_bounds = array<i64: 1, 128>}, {transform_indices = @transform_3, window_bounds = array<i64: 16, 16>}]} {
    %c0_i32 = arith.constant 0 : i32
    %0 = arith.cmpi eq, %arg1, %c0_i32 : i32
    %1 = arith.extui %0 : i1 to i32
    %c0_i32_0 = arith.constant 0 : i32
    %2 = arith.cmpi ne, %1, %c0_i32_0 : i32
    scf.if %2 {
      %cst_10 = arith.constant 0.000000e+00 : f32
      %12 = vector.broadcast %cst_10 : f32 to vector<16x128xf32>
      %c0_11 = arith.constant 0 : index
      %c0_12 = arith.constant 0 : index
      %13 = vector.load %arg6[%c0_11, %c0_12] : memref<16x128xf32, #tpu.memory_space<vmem>>, vector<16x128xf32>
      tpu.vector_store %arg6[%c0_11, %c0_12], %12 {strides = array<i32>} : memref<16x128xf32, #tpu.memory_space<vmem>>, vector<16x128xf32>,
    } else {
    }
    %c0 = arith.constant 0 : index
    %c0_1 = arith.constant 0 : index
    %3 = vector.load %arg6[%c0, %c0_1] : memref<16x128xf32, #tpu.memory_space<vmem>>, vector<16x128xf32>
    %c0_2 = arith.constant 0 : index
    %c0_3 = arith.constant 0 : index
    %4 = vector.load %arg2[%c0_2, %c0_3] : memref<16x32xf32, #tpu.memory_space<vmem>>, vector<16x32xf32>
    %c0_4 = arith.constant 0 : index
    %c0_5 = arith.constant 0 : index
    %5 = vector.load %arg3[%c0_4, %c0_5] : memref<32x128xf32, #tpu.memory_space<vmem>>, vector<32x128xf32>
    %cst = arith.constant dense<0.000000e+00> : vector<16x128xf32>
    %6 = tpu.matmul %4, %5, %cst {dimension_numbers = #tpu.dot_dimension_numbers<[1], [0], [0], [1], [0, 0, 1, 1], [], []>} : vector<16x32xf32>, vector<32x128xf32>, vector<16x128xf32> -> vector<16x128xf32>
    %7 = arith.addf %3, %6 : vector<16x128xf32>
    %c0_6 = arith.constant 0 : index
    %c0_7 = arith.constant 0 : index
    %8 = vector.load %arg6[%c0_6, %c0_7] : memref<16x128xf32, #tpu.memory_space<vmem>>, vector<16x128xf32>
    tpu.vector_store %arg6[%c0_6, %c0_7], %7 {strides = array<i32>} : memref<16x128xf32, #tpu.memory_space<vmem>>, vector<16x128xf32>,
    %c0_i32_8 = arith.constant 0 : i32
    %9 = arith.cmpi eq, %arg1, %c0_i32_8 : i32
    %10 = arith.extui %9 : i1 to i32
    %c0_i32_9 = arith.constant 0 : i32
    %11 = arith.cmpi ne, %10, %c0_i32_9 : i32
    scf.if %11 {
      %c0_10 = arith.constant 0 : index
      %c0_11 = arith.constant 0 : index
      %12 = vector.load %arg6[%c0_10, %c0_11] : memref<16x128xf32, #tpu.memory_space<vmem>>, vector<16x128xf32>
      %c0_12 = arith.constant 0 : index
      %c0_13 = arith.constant 0 : index
      %13 = vector.load %arg4[%c0_12, %c0_13] : memref<1x128xf32, #tpu.memory_space<vmem>>, vector<1x128xf32>
      %14 = vector.broadcast %13 : vector<1x128xf32> to vector<16x128xf32>
      %15 = arith.addf %12, %14 : vector<16x128xf32>
      %16 = vector.extract_strided_slice %15 {offsets = [0, 0], sizes = [16, 16], strides = [1, 1]} : vector<16x128xf32> to vector<16x16xf32>
      %c0_14 = arith.constant 0 : index
      %c0_15 = arith.constant 0 : index
      %17 = vector.load %arg5[%c0_14, %c0_15] : memref<16x16xf32, #tpu.memory_space<vmem>>, vector<16x16xf32>
      tpu.vector_store %arg5[%c0_14, %c0_15], %16 {strides = array<i32>} : memref<16x16xf32, #tpu.memory_space<vmem>>, vector<16x16xf32>,
    } else {
    }
    return
  }
  func.func @transform_0(%arg0: i32, %arg1: i32) -> (i32, i32) {
    %c0_i32 = arith.constant 0 : i32
    return %arg0, %arg1 : i32, i32
  }
  func.func @transform_1(%arg0: i32, %arg1: i32) -> (i32, i32) {
    %c0_i32 = arith.constant 0 : i32
    %c0_i32_0 = arith.constant 0 : i32
    return %arg1, %c0_i32 : i32, i32
  }
  func.func @transform_2(%arg0: i32, %arg1: i32) -> (i32, i32) {
    %c0_i32 = arith.constant 0 : i32
    %c0_i32_0 = arith.constant 0 : i32
    %c0_i32_1 = arith.constant 0 : i32
    return %c0_i32, %c0_i32_0 : i32, i32
  }
  func.func @transform_3(%arg0: i32, %arg1: i32) -> (i32, i32) {
    %c0_i32 = arith.constant 0 : i32
    %c0_i32_0 = arith.constant 0 : i32
    return %arg0, %c0_i32 : i32, i32
  }
}

</mosaic_0001>

<bundles_post_ra>
// kernel: slot_classifier.1
= control target key start
LH: loop header
LB: loop body
LE: loop exit
PB: predicated region body
PF: predicated region fallthrough
CT: control target
= control target key end

     0   :  { %8 = vsyncpa [#allocation4], 0  ;;  %s356_s0 = inlined_call_operand.hbm [shape: f32[16,32], index: 0, kind: input, shape index: {}]   ;;  %s357_s1 = inlined_call_operand.hbm [shape: f32[32,128], index: 1, kind: input, shape index: {}]   ;;  %s358_s2 = inlined_call_operand.vmem [shape: f32[1,128], index: 2, kind: input, shape index: {}]   ;;  %s359_s3 = inlined_call_operand.hbm [shape: f32[16,16], index: 3, kind: output, shape index: {}]  }
   0x1   :  { %9 = vsyncpa [#allocation7], 0 }
   0x2   :  { %10 = vsyncpa [#allocation5], 0  ;;  %s283_s12 = smov [#allocation3]   ;;  %s211_s16 = scalar_lea.hbm %s356_s0, 256 }
   0x3   :  { %s16_s13 = sshll.u32 %s283_s12, 4  ;;  %p212_p0 = scmp.ne.s32.totalorder %s356_s0, %s211_s16  ;;  %s17_s13 = int_to_ptr.vmem [resolvable:$true] %s16_s13 }
   0x4   :  { %p215_p1 = scmp.lt.u32.totalorder %s211_s16, %s356_s0 }
   0x6   :  { %p217_p2 = pnand %p215_p1, %p212_p0 }
   0x8   :  { %220 = shalt.err (!%p217_p2)
}
   0x9   :  { %s221_s21 = scalar_lea.vmem %s17_s13, 256  ;;  %p226_p4 = scmp.lt.s32.totalorder %s17_s13, %s17_s13 }
   0xa   :  { %p222_p3 = scmp.ne.s32.totalorder %s17_s13, %s221_s21  ;;  %p227_p5 = scmp.lt.s32.totalorder %s221_s21, %s221_s21 }
   0xc   :  { %p228_p6 = por %p227_p5, %p226_p4 }
   0xe   :  { %p229_p7 = pnand %p228_p6, %p222_p3 }
  0x10   :  { %232 = shalt.err (!%p229_p7)
}
  0x11   :  { %s284_s22 = smov 128   ;;  %s285_s23 = smov 8  }
  0x12   :  { %22 = dma.hbm_to_vmem [thread:$0]  %s356_s0, 256, %s17_s13, [#allocation4], %s284_s22, %s284_s22, %s285_s23  }
  0x13   :  { %s286_s26 = smov [#allocation6]   ;;  %s233_s30 = scalar_lea.hbm %s357_s1, 512 }
  0x14   :  { %s28_s27 = sshll.u32 %s286_s26, 4  ;;  %p234_p8 = scmp.ne.s32.totalorder %s357_s1, %s233_s30  ;;  %s29_s27 = int_to_ptr.vmem [resolvable:$true] %s28_s27 }
  0x15   :  { %p237_p9 = scmp.lt.u32.totalorder %s233_s30, %s357_s1 }
  0x17   :  { %p239_p10 = pnand %p237_p9, %p234_p8 }
  0x19   :  { %242 = shalt.err (!%p239_p10)
}
  0x1a   :  { %s243_s8 = scalar_lea.vmem %s29_s27, 512  ;;  %p248_p12 = scmp.lt.s32.totalorder %s29_s27, %s29_s27 }
  0x1b   :  { %p244_p11 = scmp.ne.s32.totalorder %s29_s27, %s243_s8  ;;  %p249_p13 = scmp.lt.s32.totalorder %s243_s8, %s243_s8 }
  0x1d   :  { %p250_p0 = por %p249_p13, %p248_p12 }
  0x1f   :  { %p251_p1 = pnand %p250_p0, %p244_p11 }
  0x21   :  { %254 = shalt.err (!%p251_p1)
}
  0x22   :  { %34 = dma.hbm_to_vmem [thread:$0]  %s357_s1, 512, %s29_s27, [#allocation7], %s284_s22, %s284_s22, %s285_s23  }
  0x23   :  { %277 = dma.done.wait [#allocation4], 256  }
  0x24   :  { %278 = vsyncadd [#allocation4], 4294967040 }
  0x25   :  { %279 = dma.done.wait [#allocation7], 512  }
  0x26   :  { %280 = vsyncadd [#allocation7], 4294966784  ;;  %vm57_vm0 = vcmask 261120   ;;  %v53_v0 = vld [vmem:[#allocation6] sm:$0xff]  ;;  %v54_v1 = vld [vmem:[#allocation6 + $0x8] sm:$0xff]  ;;  %s287_s11 = smov [#allocation8]  }
  0x27   :  { %v55_v2 = vld [vmem:[#allocation6 + $0x10] sm:$0xff]  ;;  %v198_v3 = vpack.c.bf16 %v54_v1, %v53_v0  ;;  %v56_v4 = vld [vmem:[#allocation6 + $0x18] sm:$0xff]  ;;  %s165_s12 = sshll.u32 %s287_s11, 4  ;;  %vm157_vm1 = vcmask 130048   ;;  %s166_s12 = int_to_ptr.vmem [resolvable:$true] %s165_s12 }
  0x28   :  { %v51_v5 = vld [vmem:[#allocation3] sm:$0xff]  ;;  %v202_v6 = vpack.c.bf16 %v56_v4, %v55_v2  ;;  %v52_v7 = vld [vmem:[#allocation3 + $0x8] sm:$0xff]  ;;  %s255_s13 = scalar_lea.vmem %s166_s12, 256  ;;  %p260_p3 = scmp.lt.s32.totalorder %s166_s12, %s166_s12 }
  0x29   :  { %195 = vmatprep.mubr.msk.f32.mxu0 %vm57_vm0, %v51_v5  ;;  %199 = vmatprep.subr.bf16.mxu0 %v198_v3  ;;  %v180_v8 = vld [vmem:[%s358_s2] ss:$0 sm:$0xff]  ;;  %p256_p2 = scmp.ne.s32.totalorder %s166_s12, %s255_s13  ;;  %p261_p4 = scmp.lt.s32.totalorder %s255_s13, %s255_s13 }
  0x2a   :  { %201 = vmatpush3.bf16.msra.mxu0 %v198_v3 }
  0x2b   :  { %203 = vmatprep.subr.bf16.mxu0 %v202_v6  ;;  %p262_p5 = por %p261_p4, %p260_p3 }
  0x2d   :  { %p263_p6 = pnand %p262_p5, %p256_p2 }
  0x2e   :  { %205 = vmatpush3.bf16.msra.mxu0 %v202_v6 }
  0x31   :  { %196 = vmatmul.mubr.msk.f32.vlgmr.msra.gmra.mrb[0].mxu0 %vm57_vm0, %v52_v7 }
 0x104   :  { %v197_v9 = vpop.f32.mrb[0].mxu0 }
 0x105   :  { %v156_v10 = vadd.f32 %v197_v9, %v180_v8  ;;  %v130_v11 = vpop.f32.mrb[1].mxu0 }
 0x106   :  { %v155_v12 = vadd.f32 %v180_v8, %v130_v11 }
 0x107   :  { %159 = vst.msk [vmem:[#allocation8 + $0x8] sm:$0xff] %vm157_vm1, %v156_v10 }
 0x108   :  { %158 = vst.msk [vmem:[#allocation8] sm:$0xff] %vm157_vm1, %v155_v12 }
 0x109   :  { %266 = shalt.err (!%p263_p6)
}
 0x10a   :  { %s267_s2 = scalar_lea.hbm %s359_s3, 256 }
 0x10b   :  { %p268_p7 = scmp.ne.s32.totalorder %s359_s3, %s267_s2  ;;  %p271_p8 = scmp.lt.u32.totalorder %s267_s2, %s359_s3 }
 0x10d   :  { %p273_p9 = pnand %p271_p8, %p268_p7 }
 0x10f   :  { %276 = shalt.err (!%p273_p9)
}
 0x110   :  { %171 = dma.vmem_to_hbm [thread:$0]  %s166_s12, 256, %s359_s3, [#allocation5], %s284_s22, %s284_s22, %s285_s23  }
 0x111   :  { %281 = dma.done.wait [#allocation5], 256  }
 0x112   :  { %282 = vsyncadd [#allocation5], 4294967040 }
 0x113   :  { %175 = vsyncpa [#allocation4], 1 }
 0x114   :  { %176 = vsyncpa [#allocation7], 1 }
 0x115   :  { %177 = vsyncpa [#allocation5], 1 }

</bundles_post_ra>
